<compile_context>
chip_gen: v7x
topology: tpu7x:2x2x1
jax: 0.10.0
libtpu: 0.0.40
codegen_flags: <defaults>
</compile_context>

<pallas_src>
import functools
import math

import jax
import jax.numpy as jnp
from jax import lax
from jax.experimental import pallas as pl
from jax.experimental.pallas import tpu as pltpu


# ----------------------------- Pallas kernels -------------------------------


def _stats_kernel(x_ref, colsum_ref, gram_ref):
    """Accumulate column sums and the K x K Gram matrix of one row tile.

    Grid = (core_splits, row_tiles).  Axis 0 is "parallel" (one partial
    accumulator per core slice -> no cross-core race on v7x); axis 1 is the
    "arbitrary" reduction axis over row tiles (resident accumulators).
    """
    i = pl.program_id(1)

    @pl.when(i == 0)
    def _init():
        colsum_ref[...] = jnp.zeros_like(colsum_ref)
        gram_ref[...] = jnp.zeros_like(gram_ref)

    x = x_ref[...]
    # Column sums in f32 (cheap XLU reduction, hidden under the DMA).
    colsum_ref[...] += jnp.sum(x.astype(jnp.float32), axis=0, keepdims=True)[None]
    # Gram matrix X^T X (K x K) on the MXU with f32 accumulation.
    gram_ref[...] += lax.dot_general(
        x, x, (((0,), (0,)), ((), ())),
        preferred_element_type=jnp.float32)[None]


def _fused_conv_bn_relu_kernel(x_ref, w_ref, scale_ref, shift_ref, o_ref):
    """One row tile: conv-as-matmul + folded BatchNorm FMA + ReLU."""
    y = jnp.dot(x_ref[...], w_ref[...], preferred_element_type=jnp.float32)
    o_ref[...] = jnp.maximum(
        y * scale_ref[...] + shift_ref[...], 0.0).astype(o_ref.dtype)


# ---------------------------- pallas_call wrappers ---------------------------


def _stats_call(xm, tile_m, core_splits, inner, vmem_limit):
    m_pad, k = xm.shape
    return pl.pallas_call(
        _stats_kernel,
        out_shape=(
            jax.ShapeDtypeStruct((core_splits, 1, k), jnp.float32),
            jax.ShapeDtypeStruct((core_splits, k, k), jnp.float32),
        ),
        grid=(core_splits, inner),
        in_specs=[
            pl.BlockSpec((tile_m, k), lambda c, i: (c * inner + i, 0)),
        ],
        out_specs=(
            pl.BlockSpec((1, 1, k), lambda c, i: (c, 0, 0)),   # per-core partial
            pl.BlockSpec((1, k, k), lambda c, i: (c, 0, 0)),   # per-core partial
        ),
        compiler_params=pltpu.CompilerParams(
            dimension_semantics=("parallel", "arbitrary"),
            vmem_limit_bytes=vmem_limit,
        ),
    )(xm)


def _fused_call(xm, wm, scale, shift, tile_m, vmem_limit):
    m_pad, k = xm.shape
    cout = wm.shape[1]
    return pl.pallas_call(
        _fused_conv_bn_relu_kernel,
        out_shape=jax.ShapeDtypeStruct((m_pad, cout), jnp.float32),
        grid=(m_pad // tile_m,),
        in_specs=[
            pl.BlockSpec((tile_m, k), lambda i: (i, 0)),
            pl.BlockSpec((k, cout), lambda i: (0, 0)),     # resident weights
            pl.BlockSpec((1, cout), lambda i: (0, 0)),     # resident BN scale
            pl.BlockSpec((1, cout), lambda i: (0, 0)),     # resident BN shift
        ],
        out_specs=pl.BlockSpec((tile_m, cout), lambda i: (i, 0)),
        compiler_params=pltpu.CompilerParams(
            dimension_semantics=("parallel",),    # independent rows -> megacore
            vmem_limit_bytes=vmem_limit,
        ),
    )(xm, wm, scale, shift)


# ------------------------------- layer wrapper --------------------------------


def _im2col(x_nhwc, ksize, stride, padding):
    n, h, w, c = x_nhwc.shape
    kh, kw = ksize
    sh, sw = stride
    ph, pw = padding
    xp = jnp.pad(x_nhwc, ((0, 0), (ph, ph), (pw, pw), (0, 0)))
    ho = (h + 2 * ph - kh) // sh + 1
    wo = (w + 2 * pw - kw) // sw + 1
    cols = []
    for i in range(kh):
        for j in range(kw):
            cols.append(
                xp[:, i:i + sh * (ho - 1) + 1:sh, j:j + sw * (wo - 1) + 1:sw, :])
    patches = jnp.concatenate(cols, axis=-1)          # (N, Ho, Wo, kh*kw*C)
    return patches.reshape(n * ho * wo, kh * kw * c), ho, wo


def _pick_tile_m(m, k, cout, x_itemsize, core_splits, vmem_limit):
    """Largest row tile whose double-buffered in+out footprint fits the budget."""
    per_row = 2 * k * x_itemsize + 2 * cout * 4        # 2x input + 2x f32 output
    budget = max(1 << 20, min(vmem_limit // 3, 16 * 1024 * 1024))
    cap = max(8, (budget // max(per_row, 1)) // 8 * 8)
    rows_per_core = -(-m // core_splits)
    rows_per_core = max(8, -(-rows_per_core // 8) * 8)
    return max(8, min(1024, cap, rows_per_core))


def basic_conv2d_forward(params, x_nchw, *, stride=(1, 1), padding=(0, 0),
                         eps=1e-3, tile_m=None, mxu_dtype=jnp.bfloat16,
                         vmem_limit=48 * 1024 * 1024, core_splits=2):
    w = params["w"]                                    # (Cout, Cin, Kh, Kw)
    gamma, beta = params["gamma"], params["beta"]
    cout, cin, kh, kw = w.shape

    x = jnp.transpose(x_nchw, (0, 2, 3, 1)).astype(jnp.float32)   # NHWC
    if mxu_dtype is not None:
        x = x.astype(mxu_dtype)     # patches / DMA carried in the MXU dtype
    n = x.shape[0]

    if kh == 1 and kw == 1 and padding == (0, 0):
        x = x[:, ::stride[0], ::stride[1], :]
        ho, wo = x.shape[1], x.shape[2]
        xm = x.reshape(n * ho * wo, cin)
        wm = jnp.transpose(w[:, :, 0, 0], (1, 0))
    else:
        xm, ho, wo = _im2col(x, (kh, kw), stride, padding)
        wm = jnp.transpose(w, (2, 3, 1, 0)).reshape(kh * kw * cin, cout)

    wm = wm.astype(jnp.float32)
    if mxu_dtype is not None:
        wm = wm.astype(mxu_dtype)

    m, k = xm.shape
    if tile_m is None:
        tile_m = _pick_tile_m(m, k, cout, xm.dtype.itemsize, core_splits, vmem_limit)
    tile_m = max(8, (tile_m // 8) * 8)

    inner = pl.cdiv(m, core_splits * tile_m)
    m_pad = core_splits * inner * tile_m
    if m_pad != m:
        xm = jnp.pad(xm, ((0, m_pad - m), (0, 0)))     # zero rows: stats-safe

    # Pass A: per-channel statistics from the input side (no y intermediate).
    colsum_p, gram_p = _stats_call(xm, tile_m, core_splits, inner, vmem_limit)
    colsum = jnp.sum(colsum_p, axis=0)                 # (1, K)   f32
    gram = jnp.sum(gram_p, axis=0)                     # (K, K)   f32

    # Fold train-mode BN into per-channel scale/shift (true row count M).
    wf = wm.astype(jnp.float32)
    inv_m = 1.0 / float(m)
    mean = (colsum @ wf) * inv_m                       # (1, Cout)
    ey2 = jnp.sum(wf * (gram @ wf), axis=0, keepdims=True) * inv_m
    var = jnp.maximum(ey2 - mean * mean, 0.0)          # biased var (train BN)
    scale = gamma.reshape(1, cout) * lax.rsqrt(var + eps)
    shift = beta.reshape(1, cout) - mean * scale

    # Pass B: fused conv matmul + BN FMA + ReLU (single read of X, single write).
    out = _fused_call(xm, wm, scale, shift, tile_m, vmem_limit)
    out = out[:m].reshape(n, ho, wo, cout)
    return jnp.transpose(out, (0, 3, 1, 2))            # back to NCHW


def basic_conv2d_init(key, in_channels, out_channels, kernel_size):
    kh, kw = kernel_size
    fan_in = in_channels * kh * kw
    bound = 1.0 / math.sqrt(fan_in)                    # PyTorch Conv2d default
    w = jax.random.uniform(key, (out_channels, in_channels, kh, kw),
                           jnp.float32, -bound, bound)
    return {"w": w,
            "gamma": jnp.ones((out_channels,), jnp.float32),
            "beta": jnp.zeros((out_channels,), jnp.float32)}


def basic_conv2d_reference(params, x_nchw, *, stride, padding, eps=1e-3):
    y = jax.lax.conv_general_dilated(
        x_nchw, params["w"], window_strides=stride,
        padding=[(padding[0], padding[0]), (padding[1], padding[1])],
        dimension_numbers=("NCHW", "OIHW", "NCHW"),
        precision=jax.lax.Precision.HIGHEST)
    mean = jnp.mean(y, axis=(0, 2, 3), keepdims=True)
    var = jnp.var(y, axis=(0, 2, 3), keepdims=True)    # biased, train-mode BN
    g = params["gamma"].reshape(1, -1, 1, 1)
    b = params["beta"].reshape(1, -1, 1, 1)
    y = (y - mean) * jax.lax.rsqrt(var + eps) * g + b
    return jnp.maximum(y, 0.0)


# ----------------------------------- main -------------------------------------


if __name__ == "__main__":
    key = jax.random.PRNGKey(0)
    kp, kx = jax.random.split(key)

    in_c, out_c = 4, 32
    ksize, stride, padding = (3, 3), (1, 1), (1, 1)

    params = basic_conv2d_init(kp, in_c, out_c, ksize)
    x = jax.random.normal(kx, (2, in_c, 16, 16), jnp.float32)   # NCHW like PyTorch

    ref = basic_conv2d_reference(params, x, stride=stride, padding=padding, eps=1e-3)

    # f32 MXU path (bit-faithful to the PyTorch module numerics).
    fwd_f32 = jax.jit(functools.partial(
        basic_conv2d_forward, stride=stride, padding=padding,
        eps=1e-3, mxu_dtype=None))
    out_f32 = fwd_f32(params, x)
    jax.block_until_ready(out_f32)
    assert out_f32.shape == (2, out_c, 16, 16), out_f32.shape
    assert bool(jnp.all(jnp.isfinite(out_f32)))
    err_f32 = float(jnp.max(jnp.abs(out_f32 - ref)))
    assert err_f32 < 2e-3, f"f32 path max abs error vs reference: {err_f32}"

    # Default bf16-operand path (native MXU dtype on v6e/v7x, halves HBM reads).
    fwd_bf16 = jax.jit(functools.partial(
        basic_conv2d_forward, stride=stride, padding=padding, eps=1e-3))
    out_bf16 = fwd_bf16(params, x)
    jax.block_until_ready(out_bf16)
    assert out_bf16.shape == (2, out_c, 16, 16), out_bf16.shape
    assert bool(jnp.all(jnp.isfinite(out_bf16)))
    err_bf16 = float(jnp.max(jnp.abs(out_bf16 - ref)))
    assert err_bf16 < 5e-2, f"bf16 path max abs error vs reference: {err_bf16}"

    print("KERNEL_OK")
</pallas_src>

<mosaic_0001>
module attributes {stable_mosaic.version = 11 : i64} {
  func.func @_stats_kernel(%arg0: i32, %arg1: i32, %arg2: memref<256x36xf32, #tpu.memory_space<vmem>>, %arg3: memref<1x1x36xf32, #tpu.memory_space<vmem>>, %arg4: memref<1x36x36xf32, #tpu.memory_space<vmem>>) attributes {dimension_semantics = [#tpu.dimension_semantics<parallel>, #tpu.dimension_semantics<arbitrary>], iteration_bounds = array<i64: 2, 1>, scalar_prefetch = 0 : i64, scratch_operands = 0 : i64, tpu.core_type = #tpu.core_type<tc>, window_params = [{transform_indices = @transform_0, window_bounds = array<i64: 256, 36>}, {transform_indices = @transform_1, window_bounds = array<i64: 1, 1, 36>}, {transform_indices = @transform_2, window_bounds = array<i64: 1, 36, 36>}]} {
    %c0_i32 = arith.constant 0 : i32
    %0 = arith.cmpi eq, %arg1, %c0_i32 : i32
    %1 = arith.extui %0 : i1 to i32
    %c0_i32_0 = arith.constant 0 : i32
    %2 = arith.cmpi ne, %1, %c0_i32_0 : i32
    scf.if %2 {
      %cst_15 = arith.constant 0.000000e+00 : f32
      %15 = vector.broadcast %cst_15 : f32 to vector<1x1x36xf32>
      %c0_16 = arith.constant 0 : index
      %c0_17 = arith.constant 0 : index
      %c0_18 = arith.constant 0 : index
      %16 = vector.load %arg3[%c0_16, %c0_17, %c0_18] : memref<1x1x36xf32, #tpu.memory_space<vmem>>, vector<1x1x36xf32>
      tpu.vector_store %arg3[%c0_16, %c0_17, %c0_18], %15 {strides = array<i32>} : memref<1x1x36xf32, #tpu.memory_space<vmem>>, vector<1x1x36xf32>,
      %cst_19 = arith.constant 0.000000e+00 : f32
      %17 = vector.broadcast %cst_19 : f32 to vector<1x36x36xf32>
      %c0_20 = arith.constant 0 : index
      %c0_21 = arith.constant 0 : index
      %c0_22 = arith.constant 0 : index
      %18 = vector.load %arg4[%c0_20, %c0_21, %c0_22] : memref<1x36x36xf32, #tpu.memory_space<vmem>>, vector<1x36x36xf32>
      tpu.vector_store %arg4[%c0_20, %c0_21, %c0_22], %17 {strides = array<i32>} : memref<1x36x36xf32, #tpu.memory_space<vmem>>, vector<1x36x36xf32>,
    } else {
    }
    %c0 = arith.constant 0 : index
    %c0_1 = arith.constant 0 : index
    %3 = vector.load %arg2[%c0, %c0_1] : memref<256x36xf32, #tpu.memory_space<vmem>>, vector<256x36xf32>
    %c0_2 = arith.constant 0 : index
    %c0_3 = arith.constant 0 : index
    %c0_4 = arith.constant 0 : index
    %4 = vector.load %arg3[%c0_2, %c0_3, %c0_4] : memref<1x1x36xf32, #tpu.memory_space<vmem>>, vector<1x1x36xf32>
    %cst = arith.constant dense<0.000000e+00> : vector<36xf32>
    %5 = vector.multi_reduction <add>, %3, %cst [0] : vector<256x36xf32> to vector<36xf32>
    %6 = vector.shape_cast %5 : vector<36xf32> to vector<1x36xf32>
    %7 = vector.shape_cast %6 : vector<1x36xf32> to vector<1x1x36xf32>
    %8 = arith.addf %4, %7 : vector<1x1x36xf32>
    %c0_5 = arith.constant 0 : index
    %c0_6 = arith.constant 0 : index
    %c0_7 = arith.constant 0 : index
    %9 = vector.load %arg3[%c0_5, %c0_6, %c0_7] : memref<1x1x36xf32, #tpu.memory_space<vmem>>, vector<1x1x36xf32>
    tpu.vector_store %arg3[%c0_5, %c0_6, %c0_7], %8 {strides = array<i32>} : memref<1x1x36xf32, #tpu.memory_space<vmem>>, vector<1x1x36xf32>,
    %c0_8 = arith.constant 0 : index
    %c0_9 = arith.constant 0 : index
    %c0_10 = arith.constant 0 : index
    %10 = vector.load %arg4[%c0_8, %c0_9, %c0_10] : memref<1x36x36xf32, #tpu.memory_space<vmem>>, vector<1x36x36xf32>
    %cst_11 = arith.constant dense<0.000000e+00> : vector<36x36xf32>
    %11 = tpu.matmul %3, %3, %cst_11 {dimension_numbers = #tpu.dot_dimension_numbers<[0], [0], [1], [1], [0, 1, 1, 1], [], []>} : vector<256x36xf32>, vector<256x36xf32>, vector<36x36xf32> -> vector<36x36xf32>
    %12 = vector.shape_cast %11 : vector<36x36xf32> to vector<1x36x36xf32>
    %13 = arith.addf %10, %12 : vector<1x36x36xf32>
    %c0_12 = arith.constant 0 : index
    %c0_13 = arith.constant 0 : index
    %c0_14 = arith.constant 0 : index
    %14 = vector.load %arg4[%c0_12, %c0_13, %c0_14] : memref<1x36x36xf32, #tpu.memory_space<vmem>>, vector<1x36x36xf32>
    tpu.vector_store %arg4[%c0_12, %c0_13, %c0_14], %13 {strides = array<i32>} : memref<1x36x36xf32, #tpu.memory_space<vmem>>, vector<1x36x36xf32>,
    return
  }
  func.func @transform_0(%arg0: i32, %arg1: i32) -> (i32, i32) {
    %c1_i32 = arith.constant 1 : i32
    %0 = arith.muli %arg0, %c1_i32 : i32
    %1 = arith.addi %0, %arg1 : i32
    %c0_i32 = arith.constant 0 : i32
    %c0_i32_0 = arith.constant 0 : i32
    return %1, %c0_i32 : i32, i32
  }
  func.func @transform_1(%arg0: i32, %arg1: i32) -> (i32, i32, i32) {
    %c0_i32 = arith.constant 0 : i32
    %c0_i32_0 = arith.constant 0 : i32
    %c0_i32_1 = arith.constant 0 : i32
    return %arg0, %c0_i32, %c0_i32_0 : i32, i32, i32
  }
  func.func @transform_2(%arg0: i32, %arg1: i32) -> (i32, i32, i32) {
    %c0_i32 = arith.constant 0 : i32
    %c0_i32_0 = arith.constant 0 : i32
    %c0_i32_1 = arith.constant 0 : i32
    return %arg0, %c0_i32, %c0_i32_0 : i32, i32, i32
  }
}

module attributes {stable_mosaic.version = 11 : i64} {
  func.func @_fused_conv_bn_relu_kernel(%arg0: i32, %arg1: memref<256x36xf32, #tpu.memory_space<vmem>>, %arg2: memref<36x32xf32, #tpu.memory_space<vmem>>, %arg3: memref<1x32xf32, #tpu.memory_space<vmem>>, %arg4: memref<1x32xf32, #tpu.memory_space<vmem>>, %arg5: memref<256x32xf32, #tpu.memory_space<vmem>>) attributes {dimension_semantics = [#tpu.dimension_semantics<parallel>], iteration_bounds = array<i64: 2>, scalar_prefetch = 0 : i64, scratch_operands = 0 : i64, tpu.core_type = #tpu.core_type<tc>, window_params = [{transform_indices = @transform_0, window_bounds = array<i64: 256, 36>}, {pipeline_mode = #tpu.pipeline_mode<synchronous>, transform_indices = @transform_1, window_bounds = array<i64: 36, 32>}, {pipeline_mode = #tpu.pipeline_mode<synchronous>, transform_indices = @transform_2, window_bounds = array<i64: 1, 32>}, {pipeline_mode = #tpu.pipeline_mode<synchronous>, transform_indices = @transform_3, window_bounds = array<i64: 1, 32>}, {transform_indices = @transform_4, window_bounds = array<i64: 256, 32>}]} {
    %c0 = arith.constant 0 : index
    %c0_0 = arith.constant 0 : index
    %0 = vector.load %arg1[%c0, %c0_0] : memref<256x36xf32, #tpu.memory_space<vmem>>, vector<256x36xf32>
    %c0_1 = arith.constant 0 : index
    %c0_2 = arith.constant 0 : index
    %1 = vector.load %arg2[%c0_1, %c0_2] : memref<36x32xf32, #tpu.memory_space<vmem>>, vector<36x32xf32>
    %cst = arith.constant dense<0.000000e+00> : vector<256x32xf32>
    %2 = tpu.matmul %0, %1, %cst {dimension_numbers = #tpu.dot_dimension_numbers<[1], [0], [0], [1], [0, 0, 1, 1], [], []>} : vector<256x36xf32>, vector<36x32xf32>, vector<256x32xf32> -> vector<256x32xf32>
    %c0_3 = arith.constant 0 : index
    %c0_4 = arith.constant 0 : index
    %3 = vector.load %arg3[%c0_3, %c0_4] : memref<1x32xf32, #tpu.memory_space<vmem>>, vector<1x32xf32>
    %4 = vector.broadcast %3 : vector<1x32xf32> to vector<256x32xf32>
    %5 = arith.mulf %2, %4 : vector<256x32xf32>
    %c0_5 = arith.constant 0 : index
    %c0_6 = arith.constant 0 : index
    %6 = vector.load %arg4[%c0_5, %c0_6] : memref<1x32xf32, #tpu.memory_space<vmem>>, vector<1x32xf32>
    %7 = vector.broadcast %6 : vector<1x32xf32> to vector<256x32xf32>
    %8 = arith.addf %5, %7 : vector<256x32xf32>
    %cst_7 = arith.constant 0.000000e+00 : f32
    %9 = vector.broadcast %cst_7 : f32 to vector<256x32xf32>
    %10 = arith.maximumf %8, %9 : vector<256x32xf32>
    %c0_8 = arith.constant 0 : index
    %c0_9 = arith.constant 0 : index
    %11 = vector.load %arg5[%c0_8, %c0_9] : memref<256x32xf32, #tpu.memory_space<vmem>>, vector<256x32xf32>
    tpu.vector_store %arg5[%c0_8, %c0_9], %10 {strides = array<i32>} : memref<256x32xf32, #tpu.memory_space<vmem>>, vector<256x32xf32>,
    return
  }
  func.func @transform_0(%arg0: i32) -> (i32, i32) {
    %c0_i32 = arith.constant 0 : i32
    %c0_i32_0 = arith.constant 0 : i32
    return %arg0, %c0_i32 : i32, i32
  }
  func.func @transform_1(%arg0: i32) -> (i32, i32) {
    %c0_i32 = arith.constant 0 : i32
    %c0_i32_0 = arith.constant 0 : i32
    %c0_i32_1 = arith.constant 0 : i32
    return %c0_i32, %c0_i32_0 : i32, i32
  }
  func.func @transform_2(%arg0: i32) -> (i32, i32) {
    %c0_i32 = arith.constant 0 : i32
    %c0_i32_0 = arith.constant 0 : i32
    %c0_i32_1 = arith.constant 0 : i32
    return %c0_i32, %c0_i32_0 : i32, i32
  }
  func.func @transform_3(%arg0: i32) -> (i32, i32) {
    %c0_i32 = arith.constant 0 : i32
    %c0_i32_0 = arith.constant 0 : i32
    %c0_i32_1 = arith.constant 0 : i32
    return %c0_i32, %c0_i32_0 : i32, i32
  }
  func.func @transform_4(%arg0: i32) -> (i32, i32) {
    %c0_i32 = arith.constant 0 : i32
    %c0_i32_0 = arith.constant 0 : i32
    return %arg0, %c0_i32 : i32, i32
  }
}

</mosaic_0001>

<bundles_post_ra>
// kernel: basic_conv2d_forward.2
= control target key start
LH: loop header
LB: loop body
LE: loop exit
PB: predicated region body
PF: predicated region fallthrough
CT: control target
= control target key end

     0   :  { %s779_s9 = smov 0   ;;  %s781_s10 = smov 0   ;;  %s1021_s0 = inlined_call_operand.vmem [shape: f32[512,36], index: 0, kind: input, shape index: {}]   ;;  %s1022_s1 = inlined_call_operand.vmem [shape: f32[2,1,36], index: 1, kind: output, shape index: {0}]   ;;  %s1023_s2 = inlined_call_operand.vmem [shape: f32[2,36,36], index: 2, kind: output, shape index: {1}]  }
   0x1   :  { %s783_s11 = smov 0  }
   0x2 LB: > { %s25_s12 = sadd.s32 1, %s757_s10  ;;  %p555_p0 = scmp.ge.s32.totalorder %s761_s11, 1  ;;  %s761_s11 = sphi %s783_s11, %s13_s11   ;;  %s757_s10 = sphi %s781_s10, %s1025_s10   ;;  %s753_s9 = sphi %s779_s9, %s1024_s9  }
   0x3   : > { %p27_p1 = scmp.ge.s32.totalorder %s25_s12, 2  ;;  %p132_p2 = scmp.lt.s32.totalorder %s761_s11, 3 }
   0x5   : > { %s1027_s12 = smov (%p27_p1, %s25_s12), 0  ;;  %p133_p3 = pnand %p555_p0, %p132_p2 }
   0x6   : > { %s556_s13 = sshll.u32 (!%p133_p3), %s753_s9, 5  ;;  %p166_p4 = scmp.lt.s32.totalorder (!%p133_p3), %s753_s9, 1  ;;  %vm178_vm0 = vcmask (!%p133_p3), 286720   ;;  %vm180_vm1 = vcmask (!%p133_p3), 293888   ;;  %v763_v0 = vmov (!%p133_p3), 0.0   ;;  %vm185_vm2 = vcmask (!%p133_p3), 289792  }
   0x7   : > { %136 = sbr.rel (%p133_p3) target bundleno = 388 (0x184), region = 24  ;;  %p160_p5 = scmp.lt.s32.totalorder (!%p133_p3), %s556_s13, 63 }
   0xe   : > { %s1029_s9 = smov (!%p166_p4, %s753_s9), 1  ;;  %s1031_s13 = smov (!%p160_p5, %s556_s13), 63 }
   0xf   : > { %s800_s16 = scalar_lea.vmem %s1022_s1, %s1029_s9  ;;  %s656_s17 = smul.u32 40, %s1029_s9 }
  0x10   : > { %s557_s18 = sshll.u32 %s1031_s13, 3  ;;  %179 = vst.msk [vmem:[%s800_s16] sm:$0x1] %vm178_vm0, %v763_v0 }
  0x11   : > { %s808_s21 = scalar_lea.vmem %s1021_s0, %s557_s18  ;;  %s813_s24 = scalar_lea.vmem %s1023_s2, %s656_s17 }
  0x12   : > { %v187_v1 = vld [vmem:[%s808_s21] sm:$0xff]  ;;  %v188_v3 = vld [vmem:[%s808_s21 + $0x8] sm:$0xff]  ;;  %181 = vst.msk [vmem:[%s813_s24] sm:$0xff] %vm180_vm1, %v763_v0  ;;  %182 = vst.msk [vmem:[%s813_s24 + $0x8] sm:$0xff] %vm180_vm1, %v763_v0 }
  0x13   : > { %v817_v2 = vld [vmem:[%s808_s21 + $0x80] sm:$0xff]  ;;  %183 = vst.msk [vmem:[%s813_s24 + $0x10] sm:$0xff] %vm180_vm1, %v763_v0  ;;  %184 = vst.msk [vmem:[%s813_s24 + $0x18] sm:$0xff] %vm180_vm1, %v763_v0  ;;  %v221_v5 = vsel %vm180_vm1, %v187_v1, 0.0  ;;  %v835_v6 = vld [vmem:[%s808_s21 + $0x88] sm:$0xff]  ;;  %v222_v7 = vsel %vm180_vm1, %v188_v3, 0.0  ;;  %v610_v39 = vpack.c.bf16 %v188_v3, %v187_v1 }
  0x14   : > { %v682_v4 = vpack.i.bf16 %v187_v1, %v817_v2  ;;  %v223_v8 = vadd.f32 %v222_v7, %v221_v5  ;;  %v189_v9 = vld [vmem:[%s808_s21 + $0x10] sm:$0xff]  ;;  %v684_v10 = vpack.i.bf16 %v188_v3, %v835_v6  ;;  %v190_v12 = vld [vmem:[%s808_s21 + $0x18] sm:$0xff]  ;;  %v191_v16 = vld [vmem:[%s808_s21 + $0x20] sm:$0xff]  ;;  %v608_v36 = vpack.c.bf16 %v835_v6, %v817_v2  ;;  %186 = vst.msk [vmem:[%s813_s24 + $0x20] sm:$0xf] %vm185_vm2, %v763_v0 }
  0x15   : > { %v224_v11 = vsel %vm180_vm1, %v189_v9, 0.0  ;;  %v843_v13 = vld [vmem:[%s808_s21 + $0x90] sm:$0xff]  ;;  %v226_v15 = vsel %vm180_vm1, %v190_v12, 0.0  ;;  %v228_v17 = vsel %vm180_vm1, %v191_v16, 0.0  ;;  %v192_v19 = vld [vmem:[%s808_s21 + $0x28] sm:$0xff]  ;;  %v852_v22 = vld [vmem:[%s808_s21 + $0x98] sm:$0xff]  ;;  %v614_v45 = vpack.c.bf16 %v190_v12, %v189_v9 }
  0x16   : > { %683 = vxpose.xlu0.b32.start [1/16] (narrow) %v682_v4, 40  ;;  %v225_v14 = vadd.f32 %v224_v11, %v223_v8  ;;  %v686_v20 = vpack.i.bf16 %v189_v9, %v843_v13  ;;  %v230_v21 = vsel %vm180_vm1, %v192_v19, 0.0  ;;  %v855_v24 = vld [vmem:[%s808_s21 + $0x30] sm:$0xff]  ;;  %v860_v27 = vld [vmem:[%s808_s21 + $0x38] sm:$0xff]  ;;  %v688_v28 = vpack.i.bf16 %v190_v12, %v852_v22  ;;  %v866_v30 = vld [vmem:[%s808_s21 + $0xa0] sm:$0xff]  ;;  %609 = vmatprep.subr.bf16.mxu0 %v608_v36 }
  0x17   : > { %v232_v25 = vsel %vm180_vm1, %v855_v24, 0.0  ;;  %v234_v29 = vsel %vm180_vm1, %v860_v27, 0.0  ;;  %v869_v32 = vld [vmem:[%s808_s21 + $0x40] sm:$0xff]  ;;  %v874_v35 = vld [vmem:[%s808_s21 + $0x48] sm:$0xff]  ;;  %v690_v37 = vpack.i.bf16 %v191_v16, %v866_v30  ;;  %v612_v40 = vpack.c.bf16 %v852_v22, %v843_v13  ;;  %v887_v43 = vld [vmem:[%s808_s21 + $0x50] sm:$0xff]  ;;  %640 = vmatprep.subr.bf16.mxu1 %v608_v36  ;;  %611 = vmatpush3.bf16.msra.mxu0 %v610_v39 }
  0x18   : > { %v227_v18 = vadd.f32 %v226_v15, %v225_v14  ;;  %v236_v33 = vsel %vm180_vm1, %v869_v32, 0.0  ;;  %v238_v38 = vsel %vm180_vm1, %v874_v35, 0.0  ;;  %v884_v41 = vld [vmem:[%s808_s21 + $0xa8] sm:$0xff]  ;;  %v240_v44 = vsel %vm180_vm1, %v887_v43, 0.0  ;;  %648 = vmatpush3.bf16.msra.mxu1 %v610_v39  ;;  %v892_v47 = vld [vmem:[%s808_s21 + $0x58] sm:$0xff]  ;;  %v900_v51 = vld [vmem:[%s808_s21 + $0xb0] sm:$0xff] }
  0x19   : > { %613 = vmatprep.subr.bf16.mxu0 %v612_v40  ;;  %v616_v48 = vpack.c.bf16 %v884_v41, %v866_v30  ;;  %641 = vmatprep.subr.bf16.mxu1 %v612_v40  ;;  %v692_v49 = vpack.i.bf16 %v192_v19, %v884_v41  ;;  %v242_v50 = vsel %vm180_vm1, %v892_v47, 0.0  ;;  %v903_v53 = vld [vmem:[%s808_s21 + $0x60] sm:$0xff]  ;;  %v906_v54 = vld [vmem:[%s808_s21 + $0xb8] sm:$0xff]  ;;  %v618_v56 = vpack.c.bf16 %v192_v19, %v191_v16  ;;  %v911_v58 = vld [vmem:[%s808_s21 + $0x68] sm:$0xff] }
  0x1a   : > { %685 = vxpose.xlu0.b32.cont [2/16] (narrow) %v684_v10, 40  ;;  %v229_v23 = vadd.f32 %v228_v17, %v227_v18  ;;  %v244_v55 = vsel %vm180_vm1, %v903_v53, 0.0  ;;  %v620_v59 = vpack.c.bf16 %v906_v54, %v900_v51  ;;  %v694_v60 = vpack.i.bf16 %v855_v24, %v900_v51  ;;  %v920_v63 = vld [vmem:[%s808_s21 + $0x70] sm:$0xff]  ;;  %v923_v1 = vld [vmem:[%s808_s21 + $0xc0] sm:$0xff]  ;;  %v926_v3 = vld [vmem:[%s808_s21 + $0xc8] sm:$0xff] }
  0x1b   : > { %615 = vmatpush3.bf16.msra.mxu0 %v614_v45  ;;  %v246_v61 = vsel %vm180_vm1, %v911_v58, 0.0  ;;  %v248_v4 = vsel %vm180_vm1, %v920_v63, 0.0  ;;  %v622_v5 = vpack.c.bf16 %v860_v27, %v855_v24  ;;  %v933_v8 = vld [vmem:[%s808_s21 + $0x78] sm:$0xff]  ;;  %v624_v9 = vpack.c.bf16 %v926_v3, %v923_v1  ;;  %v213_v15 = vld [vmem:[%s808_s21 + $0xd0] sm:$0xff]  ;;  %v215_v24 = vld [vmem:[%s808_s21 + $0xe0] sm:$0xff] }
  0x1c   : > { %v231_v26 = vadd.f32 %v230_v21, %v229_v23  ;;  %649 = vmatpush3.bf16.msra.mxu1 %v614_v45  ;;  %617 = vmatprep.subr.bf16.mxu0 %v616_v48  ;;  %v696_v10 = vpack.i.bf16 %v860_v27, %v906_v54  ;;  %v250_v11 = vsel %vm180_vm1, %v933_v8, 0.0  ;;  %v252_v14 = vsel %vm180_vm1, %v817_v2, 0.0  ;;  %v214_v16 = vld [vmem:[%s808_s21 + $0xd8] sm:$0xff] }
  0x1d   : > { %642 = vmatprep.subr.bf16.mxu1 %v616_v48  ;;  %v626_v17 = vpack.c.bf16 %v874_v35, %v869_v32  ;;  %v628_v19 = vpack.c.bf16 %v214_v16, %v213_v15  ;;  %v698_v21 = vpack.i.bf16 %v869_v32, %v923_v1  ;;  %v256_v23 = vsel %vm180_vm1, %v843_v13, 0.0  ;;  %v217_v32 = vld [vmem:[%s808_s21 + $0xf0] sm:$0xff] }
  0x1e   : > { %687 = vxpose.xlu0.b32.cont [3/16] (narrow) %v686_v20, 40  ;;  %v233_v31 = vadd.f32 %v232_v25, %v231_v26  ;;  %v254_v20 = vsel %vm180_vm1, %v835_v6, 0.0  ;;  %v216_v25 = vld [vmem:[%s808_s21 + $0xe8] sm:$0xff]  ;;  %v630_v26 = vpack.c.bf16 %v892_v47, %v887_v43  ;;  %v638_v39 = vpack.c.bf16 %v933_v8, %v920_v63 }
  0x1f   : > { %619 = vmatpush3.bf16.msra.mxu0 %v618_v56  ;;  %v632_v6 = vpack.c.bf16 %v216_v25, %v215_v24  ;;  %v706_v48 = vpack.i.bf16 %v903_v53, %v215_v24 }
  0x20   : > { %v235_v34 = vadd.f32 %v234_v29, %v233_v31  ;;  %650 = vmatpush3.bf16.msra.mxu1 %v618_v56  ;;  %621 = vmatprep.subr.bf16.mxu0 %v620_v59  ;;  %v700_v29 = vpack.i.bf16 %v874_v35, %v926_v3  ;;  %v260_v31 = vsel %vm180_vm1, %v866_v30, 0.0  ;;  %v702_v35 = vpack.i.bf16 %v887_v43, %v213_v15 }
  0x21   : > { %643 = vmatprep.subr.bf16.mxu1 %v620_v59  ;;  %v264_v30 = vsel %vm180_vm1, %v900_v51, 0.0  ;;  %v268_v43 = vsel %vm180_vm1, %v923_v1, 0.0  ;;  %v710_v59 = vpack.i.bf16 %v920_v63, %v217_v32 }
  0x22   : > { %689 = vxpose.xlu0.b32.cont [4/16] (narrow) %v688_v28, 40  ;;  %v237_v42 = vadd.f32 %v236_v33, %v235_v34  ;;  %v258_v28 = vsel %vm180_vm1, %v852_v22, 0.0  ;;  %v218_v33 = vld [vmem:[%s808_s21 + $0xf8] sm:$0xff]  ;;  %v634_v34 = vpack.c.bf16 %v911_v58, %v903_v53  ;;  %v262_v22 = vsel %vm180_vm1, %v884_v41, 0.0 }
  0x23   : > { %623 = vmatpush3.bf16.msra.mxu0 %v622_v5  ;;  %v704_v41 = vpack.i.bf16 %v892_v47, %v214_v16  ;;  %v708_v47 = vpack.i.bf16 %v911_v58, %v216_v25  ;;  %v712_v58 = vpack.i.bf16 %v933_v8, %v218_v33 }
  0x24   : > { %v239_v46 = vadd.f32 %v238_v38, %v237_v42  ;;  %651 = vmatpush3.bf16.msra.mxu1 %v622_v5  ;;  %625 = vmatprep.subr.bf16.mxu0 %v624_v9  ;;  %v266_v42 = vsel %vm180_vm1, %v906_v54, 0.0 }
  0x25   : > { %644 = vmatprep.subr.bf16.mxu1 %v624_v9 }
  0x26   : > { %691 = vxpose.xlu0.b32.cont [5/16] (narrow) %v690_v37, 40  ;;  %v241_v52 = vadd.f32 %v240_v44, %v239_v46  ;;  %v636_v37 = vpack.c.bf16 %v218_v33, %v217_v32  ;;  %v270_v46 = vsel %vm180_vm1, %v926_v3, 0.0 }
  0x27   : > { %627 = vmatpush3.bf16.msra.mxu0 %v626_v17 }
  0x28   : > { %v243_v57 = vadd.f32 %v242_v50, %v241_v52  ;;  %652 = vmatpush3.bf16.msra.mxu1 %v626_v17  ;;  %629 = vmatprep.subr.bf16.mxu0 %v628_v19  ;;  %v272_v50 = vsel %vm180_vm1, %v213_v15, 0.0  ;;  %v274_v52 = vsel %vm180_vm1, %v214_v16, 0.0 }
  0x29   : > { %645 = vmatprep.subr.bf16.mxu1 %v628_v19 }
  0x2a   : > { %693 = vxpose.xlu0.b32.cont [6/16] (narrow) %v692_v49, 40  ;;  %v245_v62 = vadd.f32 %v244_v55, %v243_v57  ;;  %v276_v55 = vsel %vm180_vm1, %v215_v24, 0.0  ;;  %v278_v57 = vsel %vm180_vm1, %v216_v25, 0.0 }
  0x2b   : > { %631 = vmatpush3.bf16.msra.mxu0 %v630_v26 }
  0x2c   : > { %v247_v7 = vadd.f32 %v246_v61, %v245_v62  ;;  %653 = vmatpush3.bf16.msra.mxu1 %v630_v26  ;;  %633 = vmatprep.subr.bf16.mxu0 %v632_v6  ;;  %v282_v62 = vsel %vm180_vm1, %v218_v33, 0.0  ;;  %v294_v33 = vld [vmem:[%s813_s24 + $0x8] sm:$0xff] }
  0x2d   : > { %646 = vmatprep.subr.bf16.mxu1 %v632_v6 }
  0x2e   : > { %695 = vxpose.xlu0.b32.cont [7/16] (narrow) %v694_v60, 40  ;;  %v249_v12 = vadd.f32 %v248_v4, %v247_v7  ;;  %v280_v60 = vsel %vm180_vm1, %v217_v32, 0.0 }
  0x2f   : > { %635 = vmatpush3.bf16.msra.mxu0 %v634_v34 }
  0x30   : > { %v251_v18 = vadd.f32 %v250_v11, %v249_v12  ;;  %654 = vmatpush3.bf16.msra.mxu1 %v634_v34  ;;  %637 = vmatprep.subr.bf16.mxu0 %v636_v37  ;;  %v219_v11 = vld [vmem:[%s800_s16] sm:$0x1] }
  0x31   : > { %647 = vmatprep.subr.bf16.mxu1 %v636_v37 }
  0x32   : > { %697 = vxpose.xlu0.b32.cont [8/16] (narrow) %v696_v10, 40  ;;  %v253_v2 = vadd.f32 %v252_v14, %v251_v18 }
  0x33   : > { %639 = vmatpush3.bf16.msra.mxu0 %v638_v39 }
  0x34   : > { %v255_v27 = vadd.f32 %v254_v20, %v253_v2  ;;  %655 = vmatpush3.bf16.msra.mxu1 %v638_v39 }
  0x36   : > { %699 = vxpose.xlu0.b32.cont [9/16] (narrow) %v698_v21, 40  ;;  %v257_v13 = vadd.f32 %v256_v23, %v255_v27 }
  0x38   : > { %v259_v36 = vadd.f32 %v258_v28, %v257_v13  ;;  %v293_v28 = vld [vmem:[%s813_s24] sm:$0xff] }
  0x3a   : > { %701 = vxpose.xlu0.b32.cont [10/16] (narrow) %v700_v29, 40  ;;  %v261_v38 = vadd.f32 %v260_v31, %v259_v36 }
  0x3c   : > { %v263_v40 = vadd.f32 %v262_v22, %v261_v38 }
  0x3e   : > { %703 = vxpose.xlu0.b32.cont [11/16] (narrow) %v702_v35, 40  ;;  %v265_v44 = vadd.f32 %v264_v30, %v263_v40  ;;  %v295_v35 = vld [vmem:[%s813_s24 + $0x10] sm:$0xff]  ;;  %v296_v40 = vld [vmem:[%s813_s24 + $0x18] sm:$0xff] }
  0x40   : > { %v267_v45 = vadd.f32 %v266_v42, %v265_v44 }
  0x42   : > { %705 = vxpose.xlu0.b32.cont [12/16] (narrow) %v704_v41, 40  ;;  %v269_v49 = vadd.f32 %v268_v43, %v267_v45  ;;  %v297_v45 = vld [vmem:[%s813_s24 + $0x20] sm:$0xf] }
  0x44   : > { %v271_v51 = vadd.f32 %v270_v46, %v269_v49 }
  0x46   : > { %707 = vxpose.xlu0.b32.cont [13/16] (narrow) %v706_v48, 40  ;;  %v273_v54 = vadd.f32 %v272_v50, %v271_v51 }
  0x48   : > { %v275_v56 = vadd.f32 %v274_v52, %v273_v54 }
  0x4a   : > { %709 = vxpose.xlu0.b32.cont [14/16] (narrow) %v708_v47, 40  ;;  %v277_v53 = vadd.f32 %v276_v55, %v275_v56 }
  0x4c   : > { %v279_v61 = vadd.f32 %v278_v57, %v277_v53 }
  0x4e   : > { %711 = vxpose.xlu0.b32.cont [15/16] (narrow) %v710_v59, 40  ;;  %v281_v1 = vadd.f32 %v280_v60, %v279_v61 }
  0x50   : > { %v283_v3 = vadd.f32 %v282_v62, %v281_v1 }
  0x52   : > { %713 = vxpose.xlu0.b32.end [16/16] (narrow) %v712_v58, 40  ;;  %v284_v4 = vrot.slane %v283_v3, 4 }
  0x54   : > { %v285_v5 = vadd.f32 %v284_v4, %v283_v3 }
  0x56   : > { %v286_v7 = vrot.slane %v285_v5, 2 }
  0x58   : > { %v287_v9 = vadd.f32 %v286_v7, %v285_v5 }
  0x5a   : > { %v288_v10 = vrot.slane %v287_v9, 1 }
  0x5c   : > { %v289_v63 = vadd.f32 %v288_v10, %v287_v9 }
  0x5e   : > { %v290_v12 = vadd.f32 %v289_v63, %v219_v11 }
  0x60   : > { %292 = vst.msk [vmem:[%s800_s16] sm:$0x1] %vm178_vm0, %v290_v12 }
  0x96   : > { %v714_v14 = vpop.trf.xlu0 }
  0x97   : > { %v715_v15 = vunpack.i.l.bf16 %v714_v14  ;;  %v718_v16 = vunpack.i.h.bf16 %v714_v14 }
  0x99   : > { %426 = vmatprep.mubr.f32.mxu0 %v715_v15 }
  0x9a   : > { %v719_v17 = vpop.trf.xlu0  ;;  %427 = vmatmul.mubr.f32.vlgmr.msra.gmra.mrb[0].mxu0 %v718_v16 }
  0x9b   : > { %v720_v8 = vunpack.i.l.bf16 %v719_v17  ;;  %v723_v18 = vunpack.i.h.bf16 %v719_v17 }
  0x9d   : > { %431 = vmatprep.mubr.f32.mxu0 %v720_v8 }
  0x9e   : > { %v724_v19 = vpop.trf.xlu0  ;;  %432 = vmatmul.mubr.f32.gmra.mrb[2].mxu0 %v723_v18 }
  0x9f   : > { %v725_v20 = vunpack.i.l.bf16 %v724_v19  ;;  %v728_v21 = vunpack.i.h.bf16 %v724_v19 }
  0xa1   : > { %436 = vmatprep.mubr.f32.mxu0 %v725_v20 }
  0xa2   : > { %v729_v2 = vpop.trf.xlu0  ;;  %437 = vmatmul.mubr.f32.gmra.mrb[4].mxu0 %v728_v21 }
  0xa3   : > { %v730_v23 = vunpack.i.l.bf16 %v729_v2  ;;  %v733_v24 = vunpack.i.h.bf16 %v729_v2 }
  0xa5   : > { %441 = vmatprep.mubr.f32.mxu1 %v730_v23 }
  0xa6   : > { %v734_v25 = vpop.trf.xlu0  ;;  %442 = vmatmul.mubr.f32.vlgmr.msra.gmra.mrb[0].mxu1 %v733_v24 }
  0xa7   : > { %v738_v26 = vunpack.i.h.bf16 %v734_v25  ;;  %v735_v27 = vunpack.i.l.bf16 %v734_v25 }
  0xa9   : > { %446 = vmatprep.mubr.f32.mxu1 %v735_v27 }
  0xaa   : > { %447 = vmatmul.mubr.f32.gmra.mrb[2].mxu1 %v738_v26 }
 0x16d   : > { %v593_v6 = vpop.f32.mrb[0].mxu0 }
 0x16e   : > { %v594_v29 = vpop.f32.mrb[1].mxu0 }
 0x16f   : > { %v595_v13 = vadd.f32 %v594_v29, %v593_v6 }
 0x171   : > { %v452_v31 = vadd.f32 %v595_v13, %v293_v28  ;;  %v596_v32 = vpop.f32.mrb[2].mxu0 }
 0x172   : > { %v597_v34 = vpop.f32.mrb[3].mxu0 }
 0x173   : > { %457 = vst.msk [vmem:[%s813_s24] sm:$0xff] %vm180_vm1, %v452_v31  ;;  %v598_v36 = vadd.f32 %v597_v34, %v596_v32 }
 0x175   : > { %v453_v37 = vadd.f32 %v598_v36, %v294_v33  ;;  %v599_v22 = vpop.f32.mrb[4].mxu0 }
 0x176   : > { %v600_v38 = vpop.f32.mrb[5].mxu0 }
 0x177   : > { %458 = vst.msk [vmem:[%s813_s24 + $0x8] sm:$0xff] %vm180_vm1, %v453_v37  ;;  %v601_v0 = vadd.f32 %v600_v38, %v599_v22 }
 0x179   : > { %v454_v30 = vadd.f32 %v601_v0, %v295_v35  ;;  %v602_v39 = vpop.f32.mrb[0].mxu1 }
 0x17a   : > { %v603_v42 = vpop.f32.mrb[1].mxu1 }
 0x17b   : > { %459 = vst.msk [vmem:[%s813_s24 + $0x10] sm:$0xff] %vm180_vm1, %v454_v30  ;;  %v604_v41 = vadd.f32 %v603_v42, %v602_v39 }
 0x17d   : > { %v455_v44 = vadd.f32 %v604_v41, %v296_v40  ;;  %v605_v43 = vpop.f32.mrb[2].mxu1 }
 0x17e   : > { %v606_v46 = vpop.f32.mrb[3].mxu1 }
 0x17f   : > { %460 = vst.msk [vmem:[%s813_s24 + $0x18] sm:$0xff] %vm180_vm1, %v455_v44  ;;  %v607_v48 = vadd.f32 %v606_v46, %v605_v43 }
 0x181   : > { %v456_v49 = vadd.f32 %v607_v48, %v297_v45 }
 0x183   : > { %462 = vst.msk [vmem:[%s813_s24 + $0x20] sm:$0xf] %vm185_vm2, %v456_v49 }
 0x184 PF: > { %s13_s11 = sadd.s32 1, %s761_s11   ;;  %s1024_s9 = smov %s757_s10 }
 0x185   : > { %p10_p6 = scmp.ge.s32.totalorder %s13_s11, 4   ;;  %s1025_s10 = smov %s1027_s12 }
 0x187   :  { %12 = sbr.rel (!%p10_p6) target bundleno = 2 (0x2), region = 70 }

// kernel: basic_conv2d_forward.3
= control target key start
LH: loop header
LB: loop body
LE: loop exit
PB: predicated region body
PF: predicated region fallthrough
CT: control target
= control target key end

     0   :  { %9 = vsyncpa [#allocation3], 0  ;;  %s1403_s0 = inlined_call_operand.vmem [shape: f32[512,36], index: 0, kind: input, shape index: {}]   ;;  %s1404_s1 = inlined_call_operand.vmem [shape: f32[36,32], index: 1, kind: input, shape index: {}]   ;;  %s1405_s2 = inlined_call_operand.vmem [shape: f32[1,32], index: 2, kind: input, shape index: {}]   ;;  %s1406_s3 = inlined_call_operand.vmem [shape: f32[1,32], index: 3, kind: input, shape index: {}]   ;;  %s1407_s4 = inlined_call_operand.hbm [shape: f32[512,32], index: 4, kind: output, shape index: {}]  }
   0x1   :  { %11 = vsyncpa [#allocation3 + $0x1], 0  ;;  %s1071_s15 = smov 0   ;;  %s1073_s16 = smov 0  }
   0x2   :  { %s1075_s17 = smov 0   ;;  %s1077_s18 = smov 0  }
   0x3 LB: > { %s1092_s19 = sadd.s32 4294967295, %s1041_s18   ;;  %s781_s20 = sadd.s32 4294967294, %s1041_s18   ;;  %s1041_s18 = sphi %s1077_s18, %s1413_s18   ;;  %s1037_s17 = sphi %s1075_s17, %s1412_s17   ;;  %s1033_s16 = sphi %s1073_s16, %s1411_s16   ;;  %s1029_s15 = sphi %s1071_s15, %s1410_s15  }
   0x4   : > { %s1096_s21 = sadd.s32 1, %s1041_s18   ;;  %s113_s22 = sadd.s32 1, %s1037_s17 }
   0x5   : > { %s110_s23 = ssub.s32 %s1041_s18, %s1096_s21  ;;  %p123_p0 = scmp.ne.s32.totalorder %s1037_s17, %s1033_s16 }
   0x6   : > { %p111_p1 = scmp.eq.s32.totalorder %s110_s23, 0  ;;  %p124_p2 = scmp.eq.s32.totalorder %s1092_s19, 1 }
   0x7   : > { %p129_p3 = scmp.ne.s32.totalorder %s1033_s16, %s1029_s15  ;;  %p130_p4 = scmp.eq.s32.totalorder %s781_s20, 1 }
   0x8   : > { %s1107_s24 = scalar_select %p111_p1, %s1037_s17, %s113_s22  }
   0x9   : > { %p1109_p5 = por %p124_p2, %p123_p0  ;;  %p1113_p6 = por %p130_p4, %p129_p3 }
   0xa   : > { %p784_p7 = scmp.ge.s32.totalorder %s1041_s18, 1  ;;  %p166_p8 = scmp.lt.s32.totalorder %s1041_s18, 3 }
   0xc   : > { %p167_p9 = pnand %p784_p7, %p166_p8 }
   0xd   : > { %v231_v0 = vld [vmem:[%s1404_s1] sm:$0xff] (!%p167_p9)  ;;  %v232_v1 = vld [vmem:[%s1404_s1 + $0x8] sm:$0xff] (!%p167_p9)  ;;  %v233_v2 = vld [vmem:[%s1404_s1 + $0x10] sm:$0xff] (!%p167_p9)  ;;  %s786_s7 = sshll.u32 (!%p167_p9), %s1092_s19, 5  ;;  %vm333_vm0 = vcmask (!%p167_p9), 1043456   ;;  %vm236_vm1 = vcmask (!%p167_p9), 293888  }
   0xe   : > { %170 = sbr.rel (%p167_p9) target bundleno = 289 (0x121), region = 36  ;;  %v924_v3 = vpack.c.bf16 (!%p167_p9), %v232_v1, %v231_v0  ;;  %v234_v4 = vld [vmem:[%s1404_s1 + $0x18] sm:$0xff] (!%p167_p9)  ;;  %p193_p10 = scmp.lt.s32.totalorder (!%p167_p9), %s786_s7, 63  ;;  %v235_v6 = vld [vmem:[%s1404_s1 + $0x20] sm:$0xf] (!%p167_p9)  ;;  %vm672_vm2 = vcmask (!%p167_p9), 261120  }
   0xf   : > { %v928_v5 = vpack.c.bf16 (!%p167_p9), %v234_v4, %v233_v2  ;;  %s189_s22 = sand.u32 (!%p167_p9), 1, %s1033_s16   ;;  %v1212_v39 = vld [vmem:[%s1405_s2] ss:$0 sm:$0xff] (!%p167_p9)  ;;  %s828_s6 = sshll.u32 (!%p167_p9), %s1092_s19, 12 }
  0x10   : > { %925 = vmatprep.subr.bf16.mxu0 (!%p167_p9), %v924_v3  ;;  %932 = vmatprep.subr.bf16.mxu1 (!%p167_p9), %v924_v3  ;;  %v1217_v41 = vld [vmem:[%s1406_s3] ss:$0 sm:$0xff] (!%p167_p9)  ;;  %s785_s30 = sshll.u32 (!%p167_p9), %s189_s22, 8  ;;  %s1348_s9 = scalar_lea.hbm (!%p167_p9), %s1407_s4, %s828_s6 }
  0x11   : > { %927 = vmatpush3.bf16.msra.mxu0 (!%p167_p9), %v924_v3  ;;  %935 = vmatpush3.bf16.msra.mxu1 (!%p167_p9), %v924_v3  ;;  %s1233_s5 = scalar_lea.vmem (!%p167_p9), [#allocation2], %s785_s30  ;;  %s1043_s12 = smov (!%p167_p9), [#allocation2]  }
  0x12   : > { %929 = vmatprep.subr.bf16.mxu0 (!%p167_p9), %v928_v5  ;;  %933 = vmatprep.subr.bf16.mxu1 (!%p167_p9), %v928_v5  ;;  %s983_s13 = sshll.u32 (!%p167_p9), %s1043_s12, 4  ;;  %s984_s13 = int_to_ptr.vmem [resolvable:$false] %s983_s13 }
  0x13   : > { %s985_s14 = scalar_lea.vmem (!%p167_p9), %s984_s13, 8192 }
  0x15   : > { %s1415_s7 = smov (!%p193_p10, %s786_s7), 63  ;;  %931 = vmatpush3.bf16.msra.mxu0 %v928_v5  ;;  %936 = vmatpush3.bf16.msra.mxu1 %v928_v5 }
  0x16   : > { %s787_s10 = sshll.u32 %s1415_s7, 3  ;;  %874 = vmatprep.subr.msk.mxu0 %vm333_vm0, %v235_v6  ;;  %934 = vmatprep.subr.msk.mxu1 %vm333_vm0, %v235_v6  ;;  %s719_s7 = sshll.u32 %s1233_s5, 4  ;;  %s1350_s7 = int_to_ptr.vmem [resolvable:$true] %s719_s7 }
  0x17   : > { %s1138_s20 = scalar_lea.vmem %s1403_s0, %s787_s10  ;;  %s1362_s10 = scalar_lea.sflag [#allocation3], %s189_s22 }
  0x18   : > { %v199_v7 = vld [vmem:[%s1138_s20] sm:$0xff]  ;;  %v200_v9 = vld [vmem:[%s1138_s20 + $0x8] sm:$0xff]  ;;  %v201_v11 = vld [vmem:[%s1138_s20 + $0x10] sm:$0xff]  ;;  %s979_s11 = scalar_lea.vmem %s1350_s7, 4096  ;;  %p986_p0 = scmp.lt.s32.totalorder %s1350_s7, %s984_s13 }
  0x19   : > { %v215_v8 = vld [vmem:[%s1138_s20 + $0x80] sm:$0xff]  ;;  %876 = vmatprep.mubr.msk.f32.mxu0 %vm236_vm1, %v199_v7  ;;  %v216_v10 = vld [vmem:[%s1138_s20 + $0x88] sm:$0xff]  ;;  %v217_v12 = vld [vmem:[%s1138_s20 + $0x90] sm:$0xff]  ;;  %875 = vmatpush3.msk.msra.mxu0 %vm333_vm0, %v235_v6  ;;  %p980_p11 = scmp.ne.s32.totalorder %s1350_s7, %s979_s11  ;;  %p987_p1 = scmp.lt.s32.totalorder %s985_s14, %s979_s11 }
  0x1a   : > { %900 = vmatprep.mubr.msk.f32.mxu1 %vm236_vm1, %v215_v8  ;;  %937 = vmatpush3.msk.msra.mxu1 %vm333_vm0, %v235_v6  ;;  %v202_v13 = vld [vmem:[%s1138_s20 + $0x18] sm:$0xff]  ;;  %v203_v15 = vld [vmem:[%s1138_s20 + $0x20] sm:$0xff]  ;;  %v204_v17 = vld [vmem:[%s1138_s20 + $0x28] sm:$0xff] }
  0x1b   : > { %877 = vmatmul.mubr.msk.f32.vlgmr.msra.gmra.mrb[0].mxu0 %vm236_vm1, %v200_v9  ;;  %901 = vmatmul.mubr.msk.f32.vlgmr.msra.gmra.mrb[0].mxu1 %vm236_vm1, %v216_v10  ;;  %v218_v14 = vld [vmem:[%s1138_s20 + $0x98] sm:$0xff]  ;;  %v219_v16 = vld [vmem:[%s1138_s20 + $0xa0] sm:$0xff]  ;;  %v220_v18 = vld [vmem:[%s1138_s20 + $0xa8] sm:$0xff]  ;;  %p981_p12 = pnand %p980_p11, %p1109_p5  ;;  %p988_p2 = por %p987_p1, %p986_p0 }
  0x1c   : > { %879 = vmatprep.mubr.msk.f32.mxu0 %vm236_vm1, %v201_v11  ;;  %903 = vmatprep.mubr.msk.f32.mxu1 %vm236_vm1, %v217_v12  ;;  %v205_v19 = vld [vmem:[%s1138_s20 + $0x30] sm:$0xff]  ;;  %v206_v21 = vld [vmem:[%s1138_s20 + $0x38] sm:$0xff]  ;;  %v207_v23 = vld [vmem:[%s1138_s20 + $0x40] sm:$0xff] }
  0x1d   : > { %v221_v20 = vld [vmem:[%s1138_s20 + $0xb0] sm:$0xff]  ;;  %v222_v22 = vld [vmem:[%s1138_s20 + $0xb8] sm:$0xff]  ;;  %v223_v24 = vld [vmem:[%s1138_s20 + $0xc0] sm:$0xff]  ;;  %p982_p13 = pneg %p981_p12 }
  0x1e   : > { %v208_v25 = vld [vmem:[%s1138_s20 + $0x48] sm:$0xff]  ;;  %v209_v27 = vld [vmem:[%s1138_s20 + $0x50] sm:$0xff]  ;;  %v210_v29 = vld [vmem:[%s1138_s20 + $0x58] sm:$0xff] }
  0x1f   : > { %880 = vmatmul.mubr.msk.f32.gmra.mrb[2].mxu0 %vm236_vm1, %v202_v13  ;;  %904 = vmatmul.mubr.msk.f32.gmra.mrb[2].mxu1 %vm236_vm1, %v218_v14  ;;  %v224_v26 = vld [vmem:[%s1138_s20 + $0xc8] sm:$0xff]  ;;  %v225_v28 = vld [vmem:[%s1138_s20 + $0xd0] sm:$0xff]  ;;  %v226_v30 = vld [vmem:[%s1138_s20 + $0xd8] sm:$0xff]  ;;  %p989_p3 = pnand %p988_p2, %p982_p13 }
  0x20   : > { %882 = vmatprep.mubr.msk.f32.mxu0 %vm236_vm1, %v203_v15  ;;  %906 = vmatprep.mubr.msk.f32.mxu1 %vm236_vm1, %v219_v16  ;;  %v211_v31 = vld [vmem:[%s1138_s20 + $0x60] sm:$0xff]  ;;  %v212_v33 = vld [vmem:[%s1138_s20 + $0x68] sm:$0xff]  ;;  %v213_v35 = vld [vmem:[%s1138_s20 + $0x70] sm:$0xff] }
  0x21   : > { %v227_v32 = vld [vmem:[%s1138_s20 + $0xe0] sm:$0xff]  ;;  %v228_v34 = vld [vmem:[%s1138_s20 + $0xe8] sm:$0xff]  ;;  %v229_v36 = vld [vmem:[%s1138_s20 + $0xf0] sm:$0xff] }
  0x22   : > { %v214_v37 = vld [vmem:[%s1138_s20 + $0x78] sm:$0xff] }
  0x23   : > { %883 = vmatmul.mubr.msk.f32.gmra.mrb[4].mxu0 %vm236_vm1, %v204_v17  ;;  %907 = vmatmul.mubr.msk.f32.gmra.mrb[4].mxu1 %vm236_vm1, %v220_v18  ;;  %v230_v38 = vld [vmem:[%s1138_s20 + $0xf8] sm:$0xff] }
  0x24   : > { %885 = vmatprep.mubr.msk.f32.mxu0 %vm236_vm1, %v205_v19  ;;  %909 = vmatprep.mubr.msk.f32.mxu1 %vm236_vm1, %v221_v20 }
  0x27   : > { %886 = vmatmul.mubr.msk.f32.gmra.mrb[6].mxu0 %vm236_vm1, %v206_v21  ;;  %910 = vmatmul.mubr.msk.f32.gmra.mrb[6].mxu1 %vm236_vm1, %v222_v22 }
  0x28   : > { %888 = vmatprep.mubr.msk.f32.mxu0 %vm236_vm1, %v207_v23  ;;  %912 = vmatprep.mubr.msk.f32.mxu1 %vm236_vm1, %v223_v24 }
  0x2b   : > { %889 = vmatmul.mubr.msk.f32.gmra.mrb[8].mxu0 %vm236_vm1, %v208_v25  ;;  %913 = vmatmul.mubr.msk.f32.gmra.mrb[8].mxu1 %vm236_vm1, %v224_v26 }
  0x2c   : > { %891 = vmatprep.mubr.msk.f32.mxu0 %vm236_vm1, %v209_v27  ;;  %915 = vmatprep.mubr.msk.f32.mxu1 %vm236_vm1, %v225_v28 }
  0x2f   : > { %892 = vmatmul.mubr.msk.f32.gmra.mrb[10].mxu0 %vm236_vm1, %v210_v29  ;;  %916 = vmatmul.mubr.msk.f32.gmra.mrb[10].mxu1 %vm236_vm1, %v226_v30 }
  0x30   : > { %894 = vmatprep.mubr.msk.f32.mxu0 %vm236_vm1, %v211_v31  ;;  %918 = vmatprep.mubr.msk.f32.mxu1 %vm236_vm1, %v227_v32 }
  0x33   : > { %895 = vmatmul.mubr.msk.f32.gmra.mrb[12].mxu0 %vm236_vm1, %v212_v33  ;;  %919 = vmatmul.mubr.msk.f32.gmra.mrb[12].mxu1 %vm236_vm1, %v228_v34 }
  0x34   : > { %897 = vmatprep.mubr.msk.f32.mxu0 %vm236_vm1, %v213_v35  ;;  %921 = vmatprep.mubr.msk.f32.mxu1 %vm236_vm1, %v229_v36 }
  0x37   : > { %898 = vmatmul.mubr.msk.f32.gmra.mrb[14].mxu0 %vm236_vm1, %v214_v37  ;;  %922 = vmatmul.mubr.msk.f32.gmra.mrb[14].mxu1 %vm236_vm1, %v230_v38 }
  0xee   : > { %v878_v40 = vpop.f32.mrb[0].mxu0  ;;  %v902_v42 = vpop.f32.mrb[0].mxu1 }
  0xef   : > { %v570_v43 = vmul.f32 %v878_v40, %v1212_v39  ;;  %v586_v44 = vmul.f32 %v902_v42, %v1212_v39  ;;  %v403_v45 = vpop.f32.mrb[1].mxu0  ;;  %v483_v46 = vpop.f32.mrb[1].mxu1 }
  0xf0   : > { %v569_v47 = vmul.f32 %v1212_v39, %v403_v45  ;;  %v585_v48 = vmul.f32 %v1212_v39, %v483_v46 }
  0xf1   : > { %v609_v49 = vadd.f32 %v1217_v41, %v570_v43  ;;  %v625_v50 = vadd.f32 %v1217_v41, %v586_v44 }
  0xf2   : > { %v608_v51 = vadd.f32 %v1217_v41, %v569_v47  ;;  %v624_v52 = vadd.f32 %v1217_v41, %v585_v48  ;;  %v881_v53 = vpop.f32.mrb[2].mxu0  ;;  %v905_v54 = vpop.f32.mrb[2].mxu1 }
  0xf3   : > { %v641_v55 = vmax.f32 %v609_v49, 0.0  ;;  %v657_v56 = vmax.f32 %v625_v50, 0.0  ;;  %v572_v57 = vmul.f32 %v881_v53, %v1212_v39  ;;  %v588_v58 = vmul.f32 %v905_v54, %v1212_v39  ;;  %v413_v59 = vpop.f32.mrb[3].mxu0  ;;  %v493_v60 = vpop.f32.mrb[3].mxu1 }
  0xf4   : > { %v640_v61 = vmax.f32 %v608_v51, 0.0  ;;  %v656_v62 = vmax.f32 %v624_v52, 0.0  ;;  %v571_v63 = vmul.f32 %v1212_v39, %v413_v59  ;;  %v587_v0 = vmul.f32 %v1212_v39, %v493_v60 }
  0xf5   : > { %674 = vst.msk [vmem:[%s1233_s5 + $0x8] sm:$0xff] %vm672_vm2, %v641_v55  ;;  %690 = vst.msk [vmem:[%s1233_s5 + $0x88] sm:$0xff] %vm672_vm2, %v657_v56  ;;  %v611_v1 = vadd.f32 %v1217_v41, %v572_v57  ;;  %v627_v2 = vadd.f32 %v1217_v41, %v588_v58 }
  0xf6   : > { %673 = vst.msk [vmem:[%s1233_s5] sm:$0xff] %vm672_vm2, %v640_v61  ;;  %689 = vst.msk [vmem:[%s1233_s5 + $0x80] sm:$0xff] %vm672_vm2, %v656_v62  ;;  %v610_v3 = vadd.f32 %v1217_v41, %v571_v63  ;;  %v626_v4 = vadd.f32 %v1217_v41, %v587_v0  ;;  %v884_v5 = vpop.f32.mrb[4].mxu0  ;;  %v908_v6 = vpop.f32.mrb[4].mxu1 }
  0xf7   : > { %v643_v7 = vmax.f32 %v611_v1, 0.0  ;;  %v659_v8 = vmax.f32 %v627_v2, 0.0  ;;  %v574_v9 = vmul.f32 %v884_v5, %v1212_v39  ;;  %v590_v10 = vmul.f32 %v908_v6, %v1212_v39  ;;  %v423_v11 = vpop.f32.mrb[5].mxu0  ;;  %v503_v12 = vpop.f32.mrb[5].mxu1 }
  0xf8   : > { %v642_v13 = vmax.f32 %v610_v3, 0.0  ;;  %v658_v14 = vmax.f32 %v626_v4, 0.0  ;;  %v573_v15 = vmul.f32 %v1212_v39, %v423_v11  ;;  %v589_v16 = vmul.f32 %v1212_v39, %v503_v12 }
  0xf9   : > { %676 = vst.msk [vmem:[%s1233_s5 + $0x18] sm:$0xff] %vm672_vm2, %v643_v7  ;;  %692 = vst.msk [vmem:[%s1233_s5 + $0x98] sm:$0xff] %vm672_vm2, %v659_v8  ;;  %v613_v17 = vadd.f32 %v1217_v41, %v574_v9  ;;  %v629_v18 = vadd.f32 %v1217_v41, %v590_v10 }
  0xfa   : > { %675 = vst.msk [vmem:[%s1233_s5 + $0x10] sm:$0xff] %vm672_vm2, %v642_v13  ;;  %691 = vst.msk [vmem:[%s1233_s5 + $0x90] sm:$0xff] %vm672_vm2, %v658_v14  ;;  %v612_v19 = vadd.f32 %v1217_v41, %v573_v15  ;;  %v628_v20 = vadd.f32 %v1217_v41, %v589_v16  ;;  %v887_v21 = vpop.f32.mrb[6].mxu0  ;;  %v911_v22 = vpop.f32.mrb[6].mxu1 }
  0xfb   : > { %v645_v23 = vmax.f32 %v613_v17, 0.0  ;;  %v661_v24 = vmax.f32 %v629_v18, 0.0  ;;  %v576_v25 = vmul.f32 %v887_v21, %v1212_v39  ;;  %v592_v26 = vmul.f32 %v911_v22, %v1212_v39  ;;  %v433_v27 = vpop.f32.mrb[7].mxu0  ;;  %v513_v28 = vpop.f32.mrb[7].mxu1 }
  0xfc   : > { %v644_v29 = vmax.f32 %v612_v19, 0.0  ;;  %v660_v30 = vmax.f32 %v628_v20, 0.0  ;;  %v575_v31 = vmul.f32 %v1212_v39, %v433_v27  ;;  %v591_v32 = vmul.f32 %v1212_v39, %v513_v28 }
  0xfd   : > { %678 = vst.msk [vmem:[%s1233_s5 + $0x28] sm:$0xff] %vm672_vm2, %v645_v23  ;;  %694 = vst.msk [vmem:[%s1233_s5 + $0xa8] sm:$0xff] %vm672_vm2, %v661_v24  ;;  %v615_v33 = vadd.f32 %v1217_v41, %v576_v25  ;;  %v631_v34 = vadd.f32 %v1217_v41, %v592_v26 }
  0xfe   : > { %677 = vst.msk [vmem:[%s1233_s5 + $0x20] sm:$0xff] %vm672_vm2, %v644_v29  ;;  %693 = vst.msk [vmem:[%s1233_s5 + $0xa0] sm:$0xff] %vm672_vm2, %v660_v30  ;;  %v614_v35 = vadd.f32 %v1217_v41, %v575_v31  ;;  %v630_v36 = vadd.f32 %v1217_v41, %v591_v32  ;;  %v890_v37 = vpop.f32.mrb[8].mxu0  ;;  %v914_v38 = vpop.f32.mrb[8].mxu1 }
  0xff   : > { %v647_v40 = vmax.f32 %v615_v33, 0.0  ;;  %v663_v42 = vmax.f32 %v631_v34, 0.0  ;;  %v578_v43 = vmul.f32 %v890_v37, %v1212_v39  ;;  %v594_v44 = vmul.f32 %v914_v38, %v1212_v39  ;;  %v443_v45 = vpop.f32.mrb[9].mxu0  ;;  %v523_v46 = vpop.f32.mrb[9].mxu1 }
 0x100   : > { %v646_v47 = vmax.f32 %v614_v35, 0.0  ;;  %v662_v48 = vmax.f32 %v630_v36, 0.0  ;;  %v577_v49 = vmul.f32 %v1212_v39, %v443_v45  ;;  %v593_v50 = vmul.f32 %v1212_v39, %v523_v46 }
 0x101   : > { %680 = vst.msk [vmem:[%s1233_s5 + $0x38] sm:$0xff] %vm672_vm2, %v647_v40  ;;  %696 = vst.msk [vmem:[%s1233_s5 + $0xb8] sm:$0xff] %vm672_vm2, %v663_v42  ;;  %v617_v51 = vadd.f32 %v1217_v41, %v578_v43  ;;  %v633_v52 = vadd.f32 %v1217_v41, %v594_v44 }
 0x102   : > { %679 = vst.msk [vmem:[%s1233_s5 + $0x30] sm:$0xff] %vm672_vm2, %v646_v47  ;;  %695 = vst.msk [vmem:[%s1233_s5 + $0xb0] sm:$0xff] %vm672_vm2, %v662_v48  ;;  %v616_v53 = vadd.f32 %v1217_v41, %v577_v49  ;;  %v632_v54 = vadd.f32 %v1217_v41, %v593_v50  ;;  %v893_v55 = vpop.f32.mrb[10].mxu0  ;;  %v917_v56 = vpop.f32.mrb[10].mxu1 }
 0x103   : > { %v649_v57 = vmax.f32 %v617_v51, 0.0  ;;  %v665_v58 = vmax.f32 %v633_v52, 0.0  ;;  %v580_v59 = vmul.f32 %v893_v55, %v1212_v39  ;;  %v596_v60 = vmul.f32 %v917_v56, %v1212_v39  ;;  %v453_v61 = vpop.f32.mrb[11].mxu0  ;;  %v533_v62 = vpop.f32.mrb[11].mxu1 }
 0x104   : > { %v648_v63 = vmax.f32 %v616_v53, 0.0  ;;  %v664_v0 = vmax.f32 %v632_v54, 0.0  ;;  %v579_v1 = vmul.f32 %v1212_v39, %v453_v61  ;;  %v595_v2 = vmul.f32 %v1212_v39, %v533_v62 }
 0x105   : > { %682 = vst.msk [vmem:[%s1233_s5 + $0x48] sm:$0xff] %vm672_vm2, %v649_v57  ;;  %698 = vst.msk [vmem:[%s1233_s5 + $0xc8] sm:$0xff] %vm672_vm2, %v665_v58  ;;  %v619_v3 = vadd.f32 %v1217_v41, %v580_v59  ;;  %v635_v4 = vadd.f32 %v1217_v41, %v596_v60 }
 0x106   : > { %681 = vst.msk [vmem:[%s1233_s5 + $0x40] sm:$0xff] %vm672_vm2, %v648_v63  ;;  %697 = vst.msk [vmem:[%s1233_s5 + $0xc0] sm:$0xff] %vm672_vm2, %v664_v0  ;;  %v618_v5 = vadd.f32 %v1217_v41, %v579_v1  ;;  %v634_v6 = vadd.f32 %v1217_v41, %v595_v2  ;;  %v896_v7 = vpop.f32.mrb[12].mxu0  ;;  %v920_v8 = vpop.f32.mrb[12].mxu1 }
 0x107   : > { %v651_v9 = vmax.f32 %v619_v3, 0.0  ;;  %v667_v10 = vmax.f32 %v635_v4, 0.0  ;;  %v582_v11 = vmul.f32 %v896_v7, %v1212_v39  ;;  %v598_v12 = vmul.f32 %v920_v8, %v1212_v39  ;;  %v463_v13 = vpop.f32.mrb[13].mxu0  ;;  %v543_v14 = vpop.f32.mrb[13].mxu1 }
 0x108   : > { %v650_v15 = vmax.f32 %v618_v5, 0.0  ;;  %v666_v16 = vmax.f32 %v634_v6, 0.0  ;;  %v581_v17 = vmul.f32 %v1212_v39, %v463_v13  ;;  %v597_v18 = vmul.f32 %v1212_v39, %v543_v14 }
 0x109   : > { %684 = vst.msk [vmem:[%s1233_s5 + $0x58] sm:$0xff] %vm672_vm2, %v651_v9  ;;  %700 = vst.msk [vmem:[%s1233_s5 + $0xd8] sm:$0xff] %vm672_vm2, %v667_v10  ;;  %v621_v19 = vadd.f32 %v1217_v41, %v582_v11  ;;  %v637_v20 = vadd.f32 %v1217_v41, %v598_v12 }
 0x10a   : > { %683 = vst.msk [vmem:[%s1233_s5 + $0x50] sm:$0xff] %vm672_vm2, %v650_v15  ;;  %699 = vst.msk [vmem:[%s1233_s5 + $0xd0] sm:$0xff] %vm672_vm2, %v666_v16  ;;  %v620_v21 = vadd.f32 %v1217_v41, %v581_v17  ;;  %v636_v22 = vadd.f32 %v1217_v41, %v597_v18  ;;  %v899_v23 = vpop.f32.mrb[14].mxu0  ;;  %v923_v24 = vpop.f32.mrb[14].mxu1 }
 0x10b   : > { %v653_v25 = vmax.f32 %v621_v19, 0.0  ;;  %v669_v26 = vmax.f32 %v637_v20, 0.0  ;;  %v584_v27 = vmul.f32 %v899_v23, %v1212_v39  ;;  %v600_v28 = vmul.f32 %v923_v24, %v1212_v39  ;;  %v473_v29 = vpop.f32.mrb[15].mxu0  ;;  %v553_v30 = vpop.f32.mrb[15].mxu1 }
 0x10c   : > { %v652_v31 = vmax.f32 %v620_v21, 0.0  ;;  %v668_v32 = vmax.f32 %v636_v22, 0.0  ;;  %v583_v33 = vmul.f32 %v1212_v39, %v473_v29  ;;  %v599_v34 = vmul.f32 %v1212_v39, %v553_v30 }
 0x10d   : > { %686 = vst.msk [vmem:[%s1233_s5 + $0x68] sm:$0xff] %vm672_vm2, %v653_v25  ;;  %702 = vst.msk [vmem:[%s1233_s5 + $0xe8] sm:$0xff] %vm672_vm2, %v669_v26  ;;  %v623_v35 = vadd.f32 %v1217_v41, %v584_v27  ;;  %v639_v36 = vadd.f32 %v1217_v41, %v600_v28 }
 0x10e   : > { %685 = vst.msk [vmem:[%s1233_s5 + $0x60] sm:$0xff] %vm672_vm2, %v652_v31  ;;  %701 = vst.msk [vmem:[%s1233_s5 + $0xe0] sm:$0xff] %vm672_vm2, %v668_v32  ;;  %v622_v39 = vadd.f32 %v1217_v41, %v583_v33  ;;  %v638_v37 = vadd.f32 %v1217_v41, %v599_v34 }
 0x10f   : > { %v655_v38 = vmax.f32 %v623_v35, 0.0  ;;  %v671_v40 = vmax.f32 %v639_v36, 0.0 }
 0x110   : > { %v654_v42 = vmax.f32 %v622_v39, 0.0  ;;  %v670_v43 = vmax.f32 %v638_v37, 0.0 }
 0x111   : > { %688 = vst.msk [vmem:[%s1233_s5 + $0x78] sm:$0xff] %vm672_vm2, %v655_v38  ;;  %704 = vst.msk [vmem:[%s1233_s5 + $0xf8] sm:$0xff] %vm672_vm2, %v671_v40 }
 0x112   : > { %687 = vst.msk [vmem:[%s1233_s5 + $0x70] sm:$0xff] %vm672_vm2, %v654_v42  ;;  %703 = vst.msk [vmem:[%s1233_s5 + $0xf0] sm:$0xff] %vm672_vm2, %v670_v43 }
 0x113   : > { %992 = shalt.err (!%p989_p3)
}
 0x114   : > { %s993_s20 = scalar_lea.hbm %s1348_s9, 4096  ;;  %s997_s27 = scalar_lea.hbm %s1407_s4, 8192 }
 0x115   : > { %p994_p4 = scmp.ne.s32.totalorder %s1348_s9, %s993_s20  ;;  %p998_p9 = scmp.lt.u32.totalorder %s1348_s9, %s1407_s4 }
 0x116   : > { %p999_p10 = scmp.lt.u32.totalorder %s997_s27, %s993_s20  ;;  %p1001_p12 = scmp.lt.u32.totalorder %s993_s20, %s1348_s9 }
 0x117   : > { %p995_p7 = pnand %p994_p4, %p1109_p5 }
 0x118   : > { %p1000_p11 = por %p999_p10, %p998_p9 }
 0x119   : > { %p996_p8 = pneg %p995_p7 }
 0x11a   : > { %p1002_p13 = por %p1001_p12, %p1000_p11 }
 0x11c   : > { %p1003_p0 = pnand %p1002_p13, %p996_p8 }
 0x11e   : > { %1006 = shalt.err (!%p1003_p0)
}
 0x11f   : > { %s1044_s30 = smov 128   ;;  %s1045_s5 = smov 8  }
 0x120   : > { %938 = dma.vmem_to_hbm [thread:$0]  (%p1109_p5), %s1350_s7, 4096, %s1348_s9, %s1362_s10, %s1044_s30, %s1044_s30, %s1045_s5  }
 0x121 PF: > { %p944_p1 = scmp.ge.s32.totalorder %s1041_s18, 2  ;;  %s734_s6 = sand.u32 1, %s1029_s15  }
 0x122   : > { %s735_s19 = scalar_lea.sflag [#allocation3], %s734_s6 }
 0x123   : > { %p941_p2 = pnand %p944_p1, %p1113_p6 }
 0x125   : > { %1024 = dma.done.wait (!%p941_p2), %s735_s19, 4096  }
 0x126   : > { %1026 = vsyncadd (!%p941_p2), %s735_s19, 4294963200  ;;  %p14_p3 = scmp.ge.s32.totalorder %s1096_s21, 4   ;;  %s1410_s15 = smov %s1033_s16 }
 0x127   : > { %s1411_s16 = smov %s1037_s17  ;;  %s1412_s17 = smov %s1107_s24 }
 0x128   : > { %s1413_s18 = smov %s1096_s21  ;;  %16 = sbr.rel (!%p14_p3) target bundleno = 3 (0x3), region = 71 }
 0x12f   :  { %740 = vsyncpa [#allocation3], 1 }
 0x130   :  { %742 = vsyncpa [#allocation3 + $0x1], 1 }

</bundles_post_ra>
